<compile_context>
chip_gen: v5e
topology: v5e:2x2
jax: 0.10.0
libtpu: 0.0.40
codegen_flags: <defaults>
</compile_context>

<pallas_src>
import functools

import jax
import jax.numpy as jnp
from jax import lax
from jax.experimental import pallas as pl
from jax.experimental.pallas import tpu as pltpu

EPS = 1e-5  # torch.nn.LayerNorm default
_MIB = 1024 * 1024
_VMEM_SLACK = 4 * _MIB  # headroom for Mosaic internal scratch


def _round_up(x, m):
    return ((x + m - 1) // m) * m


def _cdiv(a, b):
    return (a + b - 1) // b


def _vmem_capacity_bytes():
    """Per-TensorCore VMEM capacity; conservative fallback if the query fails."""
    try:
        return int(pltpu.get_tpu_info().vmem_capacity_bytes)
    except Exception:
        return 64 * _MIB  # v7x per-core size: safe lower bound everywhere


def _pick_col_tile(d_out, fits):
    """Largest lane-aligned divisor of d_out accepted by `fits`.

    Prefers 256-aligned tiles (full 2x256x256 MXU passes on v6e/v7x), then
    128-aligned; falls back to the smallest aligned divisor if nothing fits
    (the caller still caps the VMEM limit).
    """
    if fits(d_out):
        return d_out
    if d_out % 128 != 0:
        # TODO(synk): a large non-128-multiple d_out cannot be column-tiled
        # without padding; caller shrinks the row tile / caps the VMEM limit.
        return d_out
    smallest = d_out
    for step in (256, 128):
        t = (d_out // step) * step
        while t >= step:
            if d_out % t == 0:
                if fits(t):
                    return t
                smallest = min(smallest, t)
            t -= step
    return smallest


def _prenorm_kernel(x_ref, w_ref, b_ref, o_ref, xn_ref):
    """One (row_tile x col_tile) output tile.

    x_ref : (tr, d_in)   input rows (resident across the column axis)
    w_ref : (d_in, tc)   Linear weight pre-transposed to [in, out], compute dtype
    b_ref : (1, tc)      bias, f32
    o_ref : (tr, tc)     output tile
    xn_ref: (tr, d_in)   VMEM scratch: normalised rows in compute dtype
    """
    # Affine-free LayerNorm in f32, only on the first column step of a row tile.
    @pl.when(pl.program_id(1) == 0)
    def _():
        x = x_ref[...].astype(jnp.float32)
        mean = jnp.mean(x, axis=-1, keepdims=True)
        centered = x - mean
        var = jnp.mean(centered * centered, axis=-1, keepdims=True)
        xn_ref[...] = (centered * lax.rsqrt(var + EPS)).astype(xn_ref.dtype)

    # fn = Linear: y = xn @ W^T + b.  w_ref is already [d_in, tc], so this is a
    # plain [m,k]x[k,n] contraction -> native MXU feed with f32 accumulation.
    y = jnp.dot(xn_ref[...], w_ref[...], preferred_element_type=jnp.float32)
    o_ref[...] = (y + b_ref[...]).astype(o_ref.dtype)


@functools.partial(
    jax.jit,
    static_argnames=("row_tile", "col_tile", "compute_dtype", "out_dtype"))
def prenorm_linear(x, w, b, *, row_tile=512, col_tile=None,
                   compute_dtype=jnp.bfloat16, out_dtype=None):
    """PreNorm(dim, Linear) forward: Linear(LayerNorm_noaffine(x)).

    x: [..., d_in]  (bf16 activations can be fed directly; LN stats stay f32)
    w: [d_out, d_in] (PyTorch Linear layout); b: [d_out].
    compute_dtype: MXU input dtype (jnp.float32 = accuracy escape hatch).
    """
    *lead, d_in = x.shape
    d_out, d_in_w = w.shape
    assert d_in == d_in_w, (d_in, d_in_w)
    out_dtype = x.dtype if out_dtype is None else out_dtype

    rows = 1
    for s in lead:
        rows *= s
    x2 = x.reshape(rows, d_in)

    x_isz = jnp.dtype(x.dtype).itemsize
    c_isz = jnp.dtype(compute_dtype).itemsize
    o_isz = jnp.dtype(out_dtype).itemsize

    budget = int(_vmem_capacity_bytes() * 0.80)

    def footprint(tr_, tc_, w_bufs):
        return (2 * tr_ * d_in * x_isz          # x tiles (double-buffered)
                + w_bufs * tc_ * d_in * c_isz   # weight tiles
                + 2 * tc_ * 4                   # bias tiles
                + 2 * tr_ * tc_ * o_isz         # output tiles
                + tr_ * d_in * c_isz)           # xn scratch

    def fits(tr_, tc_, w_bufs):
        return footprint(tr_, tc_, w_bufs) * 5 // 4 + _VMEM_SLACK <= budget

    # --- Row tile: fat (multiple of 32 for any dtype's sublane packing),
    # load-balanced across tiles, and guaranteed >= 2 tiles when rows permit so
    # the "parallel" row axis feeds both v7x TensorCores.
    n_row_tiles = max(_cdiv(rows, max(row_tile, 32)), 2 if rows >= 64 else 1)
    tr = _round_up(_cdiv(rows, n_row_tiles), 32)

    # --- Column tile: keep the whole weight VMEM-resident when it fits (its
    # block index is then constant across the grid, so Pallas reads it from HBM
    # exactly once); otherwise shrink tc first (weight tiles dominate VMEM) and
    # tr only as a last resort.
    if (col_tile is None or col_tile >= d_out) and fits(tr, d_out, 2):
        tc = d_out
    else:
        cap = d_out if col_tile is None else col_tile
        tc = _pick_col_tile(d_out, lambda t: t <= cap and fits(tr, t, 2))
        while not fits(tr, tc, 2) and tr > 64:
            tr = max(32, _round_up(tr // 2, 32))

    rows_p = _round_up(rows, tr)
    if rows_p != rows:
        x2 = jnp.pad(x2, ((0, rows_p - rows), (0, 0)))

    # One-time HBM-side transpose + cast: the kernel sees W as [d_in, d_out] in
    # the compute dtype (no per-step astype, no in-kernel transpose).
    w_t = w.T.astype(compute_dtype)
    b_c = b.astype(jnp.float32).reshape(1, d_out)

    grid = (rows_p // tr, d_out // tc)

    vmem_limit = int(min(budget,
                         max(32 * _MIB,
                             footprint(tr, tc, 2) * 5 // 4 + _VMEM_SLACK)))

    out_p = pl.pallas_call(
        _prenorm_kernel,
        out_shape=jax.ShapeDtypeStruct((rows_p, d_out), out_dtype),
        grid_spec=pltpu.PrefetchScalarGridSpec(
            num_scalar_prefetch=0,
            grid=grid,
            in_specs=[
                pl.BlockSpec((tr, d_in), lambda i, j: (i, 0)),   # x rows (resident over j)
                pl.BlockSpec((d_in, tc), lambda i, j: (0, j)),   # W^T tile ([in, out])
                pl.BlockSpec((1, tc), lambda i, j: (0, j)),      # bias tile
            ],
            out_specs=pl.BlockSpec((tr, tc), lambda i, j: (i, j)),
            scratch_shapes=[pltpu.VMEM((tr, d_in), compute_dtype)],
        ),
        compiler_params=pltpu.CompilerParams(
            dimension_semantics=("parallel", "arbitrary"),
            vmem_limit_bytes=vmem_limit),
    )(x2, w_t, b_c)

    out = out_p[:rows]
    return out.reshape(*lead, d_out)


def _reference(x, w, b, compute_dtype=None):
    xf = x.astype(jnp.float32)
    mean = jnp.mean(xf, axis=-1, keepdims=True)
    var = jnp.mean((xf - mean) ** 2, axis=-1, keepdims=True)
    xn = (xf - mean) * lax.rsqrt(var + EPS)
    if compute_dtype is not None:          # mirror the kernel's MXU numerics
        xn = xn.astype(compute_dtype)
        wm = w.astype(compute_dtype)
    else:
        wm = w.astype(jnp.float32)
    y = jnp.dot(xn, wm.T, preferred_element_type=jnp.float32)
    return (y + b.astype(jnp.float32)).astype(x.dtype)


def _check(x, w, b, **kw):
    out = jax.block_until_ready(prenorm_linear(x, w, b, **kw))
    assert out.shape == (*x.shape[:-1], w.shape[0]), out.shape
    # Tight check vs. a reference mirroring the kernel's bf16 matmul numerics.
    ref_bf16 = _reference(x, w, b, compute_dtype=jnp.bfloat16)
    assert jnp.allclose(out, ref_bf16, atol=5e-3, rtol=5e-3), (
        float(jnp.max(jnp.abs(out - ref_bf16))))
    # Loose sanity check vs. the pure-f32 reference (bf16 rounding tolerance).
    ref_f32 = _reference(x, w, b)
    assert jnp.allclose(out, ref_f32, atol=5e-2, rtol=5e-2), (
        float(jnp.max(jnp.abs(out - ref_f32))))
    return out


if __name__ == "__main__":
    key = jax.random.PRNGKey(0)

    def make(B, N, D, k):
        kx, kw, kb = jax.random.split(k, 3)
        xx = jax.random.normal(kx, (B, N, D), dtype=jnp.float32)
        bound = 1.0 / (D ** 0.5)           # PyTorch Linear init bound
        ww = jax.random.uniform(kw, (D, D), minval=-bound, maxval=bound,
                                dtype=jnp.float32)
        bb = jax.random.uniform(kb, (D,), minval=-bound, maxval=bound,
                                dtype=jnp.float32)
        return xx, ww, bb

    k1, k2, k3 = jax.random.split(key, 3)

    # Small shape consistent with PreNorm: batch=2, seq=8, dim=32 (fn = Linear(32, 32)).
    _check(*make(2, 8, 32, k1))

    # Multi-row-tile path with row padding (rows=140 -> two 96-row tiles).
    _check(*make(2, 70, 32, k2))

    # Multi-column-tile path (column grid J=2) exercising xn-scratch reuse.
    _check(*make(2, 8, 256, k3), col_tile=128)

    print("KERNEL_OK")
</pallas_src>

<mosaic_0001>
module attributes {stable_mosaic.version = 11 : i64} {
  func.func @_prenorm_kernel(%arg0: i32, %arg1: i32, %arg2: memref<32x32xf32, #tpu.memory_space<vmem>>, %arg3: memref<32x32xbf16, #tpu.memory_space<vmem>>, %arg4: memref<1x32xf32, #tpu.memory_space<vmem>>, %arg5: memref<32x32xf32, #tpu.memory_space<vmem>>, %arg6: memref<32x32xbf16, #tpu.memory_space<vmem>>) attributes {dimension_semantics = [#tpu.dimension_semantics<parallel>, #tpu.dimension_semantics<arbitrary>], iteration_bounds = array<i64: 1, 1>, scalar_prefetch = 0 : i64, scratch_operands = 1 : i64, tpu.core_type = #tpu.core_type<tc>, window_params = [{transform_indices = @transform_0, window_bounds = array<i64: 32, 32>}, {transform_indices = @transform_1, window_bounds = array<i64: 32, 32>}, {transform_indices = @transform_2, window_bounds = array<i64: 1, 32>}, {transform_indices = @transform_3, window_bounds = array<i64: 32, 32>}]} {
    %c0_i32 = arith.constant 0 : i32
    %0 = arith.cmpi eq, %arg1, %c0_i32 : i32
    %1 = arith.extui %0 : i1 to i32
    %c0_i32_0 = arith.constant 0 : i32
    %2 = arith.cmpi ne, %1, %c0_i32_0 : i32
    scf.if %2 {
      %c0_8 = arith.constant 0 : index
      %c0_9 = arith.constant 0 : index
      %10 = vector.load %arg2[%c0_8, %c0_9] : memref<32x32xf32, #tpu.memory_space<vmem>>, vector<32x32xf32>
      %cst_10 = arith.constant dense<0.000000e+00> : vector<32xf32>
      %11 = vector.multi_reduction <add>, %10, %cst_10 [1] : vector<32x32xf32> to vector<32xf32>
      %12 = vector.shape_cast %11 : vector<32xf32> to vector<32x1xf32>
      %cst_11 = arith.constant 3.200000e+01 : f32
      %13 = vector.broadcast %cst_11 : f32 to vector<32x1xf32>
      %14 = arith.divf %12, %13 : vector<32x1xf32>
      %15 = vector.broadcast %14 : vector<32x1xf32> to vector<32x32xf32>
      %16 = arith.subf %10, %15 : vector<32x32xf32>
      %17 = arith.mulf %16, %16 : vector<32x32xf32>
      %cst_12 = arith.constant dense<0.000000e+00> : vector<32xf32>
      %18 = vector.multi_reduction <add>, %17, %cst_12 [1] : vector<32x32xf32> to vector<32xf32>
      %19 = vector.shape_cast %18 : vector<32xf32> to vector<32x1xf32>
      %cst_13 = arith.constant 3.200000e+01 : f32
      %20 = vector.broadcast %cst_13 : f32 to vector<32x1xf32>
      %21 = arith.divf %19, %20 : vector<32x1xf32>
      %cst_14 = arith.constant 9.99999974E-6 : f32
      %22 = vector.broadcast %cst_14 : f32 to vector<32x1xf32>
      %23 = arith.addf %21, %22 : vector<32x1xf32>
      %24 = math.rsqrt %23 : vector<32x1xf32>
      %25 = vector.broadcast %24 : vector<32x1xf32> to vector<32x32xf32>
      %26 = arith.mulf %16, %25 : vector<32x32xf32>
      %27 = arith.truncf %26 : vector<32x32xf32> to vector<32x32xbf16>
      %c0_15 = arith.constant 0 : index
      %c0_16 = arith.constant 0 : index
      %28 = vector.load %arg6[%c0_15, %c0_16] : memref<32x32xbf16, #tpu.memory_space<vmem>>, vector<32x32xbf16>
      tpu.vector_store %arg6[%c0_15, %c0_16], %27 {strides = array<i32>} : memref<32x32xbf16, #tpu.memory_space<vmem>>, vector<32x32xbf16>,
    } else {
    }
    %c0 = arith.constant 0 : index
    %c0_1 = arith.constant 0 : index
    %3 = vector.load %arg6[%c0, %c0_1] : memref<32x32xbf16, #tpu.memory_space<vmem>>, vector<32x32xbf16>
    %c0_2 = arith.constant 0 : index
    %c0_3 = arith.constant 0 : index
    %4 = vector.load %arg3[%c0_2, %c0_3] : memref<32x32xbf16, #tpu.memory_space<vmem>>, vector<32x32xbf16>
    %cst = arith.constant dense<0.000000e+00> : vector<32x32xf32>
    %5 = tpu.matmul %3, %4, %cst {dimension_numbers = #tpu.dot_dimension_numbers<[1], [0], [0], [1], [0, 0, 1, 1], [], []>} : vector<32x32xbf16>, vector<32x32xbf16>, vector<32x32xf32> -> vector<32x32xf32>
    %c0_4 = arith.constant 0 : index
    %c0_5 = arith.constant 0 : index
    %6 = vector.load %arg4[%c0_4, %c0_5] : memref<1x32xf32, #tpu.memory_space<vmem>>, vector<1x32xf32>
    %7 = vector.broadcast %6 : vector<1x32xf32> to vector<32x32xf32>
    %8 = arith.addf %5, %7 : vector<32x32xf32>
    %c0_6 = arith.constant 0 : index
    %c0_7 = arith.constant 0 : index
    %9 = vector.load %arg5[%c0_6, %c0_7] : memref<32x32xf32, #tpu.memory_space<vmem>>, vector<32x32xf32>
    tpu.vector_store %arg5[%c0_6, %c0_7], %8 {strides = array<i32>} : memref<32x32xf32, #tpu.memory_space<vmem>>, vector<32x32xf32>,
    return
  }
  func.func @transform_0(%arg0: i32, %arg1: i32) -> (i32, i32) {
    %c0_i32 = arith.constant 0 : i32
    %c0_i32_0 = arith.constant 0 : i32
    return %arg0, %c0_i32 : i32, i32
  }
  func.func @transform_1(%arg0: i32, %arg1: i32) -> (i32, i32) {
    %c0_i32 = arith.constant 0 : i32
    %c0_i32_0 = arith.constant 0 : i32
    return %c0_i32, %arg1 : i32, i32
  }
  func.func @transform_2(%arg0: i32, %arg1: i32) -> (i32, i32) {
    %c0_i32 = arith.constant 0 : i32
    %c0_i32_0 = arith.constant 0 : i32
    return %c0_i32, %arg1 : i32, i32
  }
  func.func @transform_3(%arg0: i32, %arg1: i32) -> (i32, i32) {
    %c0_i32 = arith.constant 0 : i32
    return %arg0, %arg1 : i32, i32
  }
}

</mosaic_0001>

<bundles_post_ra>
// kernel: prenorm_linear.1
= control target key start
LH: loop header
LB: loop body
LE: loop exit
PB: predicated region body
PF: predicated region fallthrough
CT: control target
= control target key end

     0   :  { %vm23_vm0 = vcmask 261120   ;;  %v232_v8 = vmov 32.0   ;;  %vm123_vm8 = vcmask 257024   ;;  %s324_s0 = inlined_call_operand.vmem [shape: f32[32,32], index: 0, kind: input, shape index: {}]   ;;  %s325_s2 = inlined_call_operand.vmem [shape: f32[1,32], index: 2, kind: input, shape index: {}]   ;;  %s326_s1 = inlined_call_operand.vmem [shape: bf16[32,32], index: 1, kind: input, shape index: {}]   ;;  %s327_s3 = inlined_call_operand.vmem [shape: f32[32,32], index: 3, kind: output, shape index: {}]  }
   0x1   :  { %v21_v0 = vld [vmem:[%s324_s0 + $0x10] sm:$0xff]  ;;  %v19_v1 = vld [vmem:[%s324_s0] sm:$0xff]  ;;  %v22_v4 = vld [vmem:[%s324_s0 + $0x18] sm:$0xff]  ;;  %222 = vrcp.f32 %v232_v8 }
   0x2   :  { %v30_v2 = vsel %vm23_vm0, %v21_v0, 0.0  ;;  %v24_v3 = vsel %vm23_vm0, %v19_v1, 0.0  ;;  %v20_v5 = vld [vmem:[%s324_s0 + $0x8] sm:$0xff]  ;;  %v33_v6 = vsel %vm23_vm0, %v22_v4, 0.0  ;;  %v216_v42 = vld [vmem:[%s326_s1] sm:$0xff] }
   0x3   :  { %31 = vadd.xlane.f32.xlu1 %v30_v2  ;;  %25 = vadd.xlane.f32.xlu0 %v24_v3  ;;  %v27_v7 = vsel %vm23_vm0, %v20_v5, 0.0  ;;  %v217_v41 = vld [vmem:[%s326_s1 + $0x8] sm:$0xff] }
   0x4   :  { %175 = vmatpush.bf16.msra.mxu0 %v217_v41  ;;  %218 = vmatpush.bf16.msra.mxu1 %v217_v41 }
   0x7   :  { %v223_v9 = vpop.eup %222 }
   0x8   :  { %v37_v10 = vmul.f32 32.0, %v223_v9  ;;  %vm41_vm1 = vweird.f32 %v223_v9  ;;  %176 = vmatpush.bf16.msra.mxu0 %v216_v42  ;;  %219 = vmatpush.bf16.msra.mxu1 %v216_v42 }
   0xa   :  { %v38_v11 = vsub.f32 1.0, %v37_v10 }
   0xb   :  { %34 = vadd.xlane.f32.xlu1 %v33_v6  ;;  %28 = vadd.xlane.f32.xlu0 %v27_v7 }
   0xc   :  { %v39_v12 = vmul.f32 %v223_v9, %v38_v11 }
   0xe   :  { %v40_v13 = vadd.f32 %v223_v9, %v39_v12 }
  0x10   :  { %v42_v14 = vsel %vm41_vm1, %v223_v9, %v40_v13 }
  0x76   :  { %v32_v15 = vpop.xlane.xlu1 %31  ;;  %v26_v16 = vpop.xlane.xlu0 %25 }
  0x77   :  { %v45_v17 = vmul.f32 %v42_v14, %v32_v15  ;;  %v43_v18 = vmul.f32 %v42_v14, %v26_v16 }
  0x79   :  { %v269_v19 = vsub.f32 %v21_v0, %v45_v17  ;;  %v271_v20 = vsub.f32 %v19_v1, %v43_v18 }
  0x7b   :  { %v53_v21 = vmul.f32 %v269_v19, %v269_v19  ;;  %v51_v22 = vmul.f32 %v271_v20, %v271_v20 }
  0x7d   :  { %v61_v23 = vsel %vm23_vm0, %v53_v21, 0.0  ;;  %v55_v24 = vsel %vm23_vm0, %v51_v22, 0.0 }
  0x7e   :  { %v35_v25 = vpop.xlane.xlu1 %34  ;;  %62 = vadd.xlane.f32.xlu0 %v61_v23  ;;  %56 = vadd.xlane.f32.xlu2 %v55_v24  ;;  %v29_v26 = vpop.xlane.xlu0 %28  ;;  %v221_v23 = vld [vmem:[%s325_s2] ss:$0 sm:$0xff] }
  0x7f   :  { %v46_v27 = vmul.f32 %v42_v14, %v35_v25  ;;  %v44_v28 = vmul.f32 %v42_v14, %v29_v26 }
  0x81   :  { %v279_v29 = vsub.f32 %v22_v4, %v46_v27  ;;  %v281_v30 = vsub.f32 %v20_v5, %v44_v28 }
  0x83   :  { %v54_v31 = vmul.f32 %v279_v29, %v279_v29  ;;  %v52_v32 = vmul.f32 %v281_v30, %v281_v30 }
  0x85   :  { %v64_v33 = vsel %vm23_vm0, %v54_v31, 0.0  ;;  %v58_v34 = vsel %vm23_vm0, %v52_v32, 0.0 }
  0x86   :  { %65 = vadd.xlane.f32.xlu1 %v64_v33  ;;  %59 = vadd.xlane.f32.xlu2 %v58_v34 }
  0xf1   :  { %v57_v35 = vpop.xlane.xlu2 %56  ;;  %v63_v36 = vpop.xlane.xlu0 %62 }
  0xf2   :  { %v67_v37 = vmul.f32 %v57_v35, %v42_v14  ;;  %v69_v38 = vmul.f32 %v63_v36, %v42_v14 }
  0xf4   :  { %v71_v39 = vadd.f32 1e-05, %v67_v37  ;;  %v73_v40 = vadd.f32 1e-05, %v69_v38 }
  0xf6   :  { %224 = vrsqrt.f32 %v71_v39  ;;  %vm81_vm4 = vweird.f32 %v71_v39  ;;  %vm101_vm6 = vweird.f32 %v73_v40 }
  0xf7   :  { %226 = vrsqrt.f32 %v73_v40 }
  0xf9   :  { %v66_v43 = vpop.xlane.xlu1 %65  ;;  %v60_v44 = vpop.xlane.xlu2 %59 }
  0xfa   :  { %v70_v45 = vmul.f32 %v66_v43, %v42_v14  ;;  %v68_v46 = vmul.f32 %v60_v44, %v42_v14 }
  0xfc   :  { %v225_v47 = vpop.eup %224  ;;  %v74_v48 = vadd.f32 1e-05, %v70_v45  ;;  %v72_v49 = vadd.f32 1e-05, %v68_v46 }
  0xfd   :  { %v227_v50 = vpop.eup %226  ;;  %v76_v51 = vmul.f32 %v225_v47, %v71_v39  ;;  %vm82_vm2 = vweird.f32 %v225_v47 }
  0xfe   :  { %v96_v52 = vmul.f32 %v227_v50, %v73_v40  ;;  %228 = vrsqrt.f32 %v74_v48  ;;  %vm102_vm3 = vweird.f32 %v227_v50  ;;  %vm83_vm5 = vmor %vm81_vm4, %vm82_vm2  ;;  %vm111_vm11 = vweird.f32 %v74_v48 }
  0xff   :  { %v77_v53 = vmul.f32 %v225_v47, %v76_v51  ;;  %230 = vrsqrt.f32 %v72_v49  ;;  %vm103_vm7 = vmor %vm101_vm6, %vm102_vm3  ;;  %vm91_vm13 = vweird.f32 %v72_v49 }
 0x100   :  { %v97_v54 = vmul.f32 %v227_v50, %v96_v52 }
 0x101   :  { %v78_v55 = vmul.f32 0.5, %v77_v53 }
 0x102   :  { %v98_v56 = vmul.f32 0.5, %v97_v54 }
 0x103   :  { %v79_v57 = vsub.f32 1.5, %v78_v55 }
 0x104   :  { %v229_v58 = vpop.eup %228  ;;  %v99_v59 = vsub.f32 1.5, %v98_v56 }
 0x105   :  { %v231_v60 = vpop.eup %230  ;;  %v80_v61 = vmul.f32 %v225_v47, %v79_v57  ;;  %v106_v62 = vmul.f32 %v229_v58, %v74_v48  ;;  %vm112_vm9 = vweird.f32 %v229_v58 }
 0x106   :  { %v100_v63 = vmul.f32 %v227_v50, %v99_v59  ;;  %v86_v0 = vmul.f32 %v231_v60, %v72_v49  ;;  %vm92_vm10 = vweird.f32 %v231_v60  ;;  %vm113_vm12 = vmor %vm111_vm11, %vm112_vm9 }
 0x107   :  { %v84_v1 = vsel %vm83_vm5, %v225_v47, %v80_v61  ;;  %v107_v2 = vmul.f32 %v229_v58, %v106_v62  ;;  %vm93_vm14 = vmor %vm91_vm13, %vm92_vm10 }
 0x108   :  { %v115_v3 = vmul.f32 %v84_v1, %v271_v20  ;;  %v104_v4 = vsel %vm103_vm7, %v227_v50, %v100_v63  ;;  %v87_v5 = vmul.f32 %v231_v60, %v86_v0 }
 0x109   :  { %v117_v6 = vmul.f32 %v104_v4, %v269_v19  ;;  %v108_v7 = vmul.f32 0.5, %v107_v2 }
 0x10a   :  { %v119_v8 = vpack.c.bf16 %v115_v3, %v115_v3  ;;  %v88_v9 = vmul.f32 0.5, %v87_v5 }
 0x10b   :  { %v121_v10 = vpack.c.bf16 %v117_v6, %v117_v6  ;;  %v109_v11 = vsub.f32 1.5, %v108_v7 }
 0x10c   :  { %124 = vst.msk [vmem:[#allocation2] sm:$0xf] %vm123_vm8, %v119_v8  ;;  %v89_v12 = vsub.f32 1.5, %v88_v9 }
 0x10d   :  { %126 = vst.msk [vmem:[#allocation2 + $0x8] sm:$0xf] %vm123_vm8, %v121_v10  ;;  %v110_v13 = vmul.f32 %v229_v58, %v109_v11 }
 0x10e   :  { %v90_v14 = vmul.f32 %v231_v60, %v89_v12 }
 0x10f   :  { %v114_v15 = vsel %vm113_vm12, %v229_v58, %v110_v13 }
 0x110   :  { %v118_v16 = vmul.f32 %v114_v15, %v279_v29  ;;  %v94_v17 = vsel %vm93_vm14, %v231_v60, %v90_v14 }
 0x111   :  { %v116_v18 = vmul.f32 %v94_v17, %v281_v30 }
 0x112   :  { %v122_v19 = vpack.c.bf16 %v118_v16, %v118_v16 }
 0x113   :  { %v120_v20 = vpack.c.bf16 %v116_v18, %v116_v18 }
 0x114   :  { %127 = vst.msk [vmem:[#allocation2 + $0xc] sm:$0xf] %vm123_vm8, %v122_v19 }
 0x115   :  { %125 = vst.msk [vmem:[#allocation2 + $0x4] sm:$0xf] %vm123_vm8, %v120_v20 }
 0x11b   :  { %v215_v21 = vld [vmem:[#allocation2 + $0x8] sm:$0xff] }
 0x11c   :  { %v214_v22 = vld [vmem:[#allocation2] sm:$0xff]  ;;  %213 = vmatmul.msk.bf16.vlgmr.msra.gmra.mxu1 %vm23_vm0, %v215_v21 }
 0x11d   :  { %212 = vmatmul.msk.bf16.vlgmr.msra.gmra.mxu0 %vm23_vm0, %v214_v22 }
 0x199   :  { %v183_v24 = vpop.f32.mrf.mxu1 }
 0x19a   :  { %v178_v25 = vpop.f32.mrf.mxu0  ;;  %v184_v26 = vadd.f32 %v221_v23, %v183_v24 }
 0x19b   :  { %v179_v27 = vadd.f32 %v221_v23, %v178_v25 }
 0x19c   :  { %190 = vst.msk [vmem:[%s327_s3 + $0x10] sm:$0xff] %vm23_vm0, %v184_v26 }
 0x19d   :  { %188 = vst.msk [vmem:[%s327_s3] sm:$0xff] %vm23_vm0, %v179_v27 }
 0x1a1   :  { %v185_v28 = vpop.f32.mrf.mxu1 }
 0x1a2   :  { %v180_v29 = vpop.f32.mrf.mxu0  ;;  %v186_v30 = vadd.f32 %v221_v23, %v185_v28 }
 0x1a3   :  { %v181_v31 = vadd.f32 %v221_v23, %v180_v29 }
 0x1a4   :  { %191 = vst.msk [vmem:[%s327_s3 + $0x18] sm:$0xff] %vm23_vm0, %v186_v30 }
 0x1a5   :  { %189 = vst.msk [vmem:[%s327_s3 + $0x8] sm:$0xff] %vm23_vm0, %v181_v31 }

</bundles_post_ra>
